<compile_context>
chip_gen: v5e
topology: v5e:2x2
jax: 0.10.0
libtpu: 0.0.40
codegen_flags: <defaults>
</compile_context>

<pallas_src>
import math

import jax
import jax.numpy as jnp
from jax.experimental import pallas as pl
from jax.experimental.pallas import tpu as pltpu

KERNEL_SIZE = 3
SIGMA = 1.0


def _gaussian_1d(kernel_size: int = KERNEL_SIZE, sigma: float = SIGMA):
    half = (kernel_size - 1) / 2.0
    xs = [i - half for i in range(kernel_size)]
    g = [math.exp(-(x * x) / (2.0 * sigma * sigma)) for x in xs]
    s = sum(g)
    return [v / s for v in g]


# Normalized 1-D Gaussian taps, baked into the kernel as Python floats.
_G_M, _G_C, _G_P = _gaussian_1d()


def _retina_blur_kernel(x_ref, o_ref):
    """x_ref/o_ref: (1, H, W) VMEM blocks; 3x3 separable Gaussian, zero pad."""
    x = x_ref[0].astype(jnp.float32)          # (H, W)
    H, W = x.shape

    # ---- horizontal (lane) pass: tmp[i,j] = g*x[i,j-1] + g*x[i,j] + g*x[i,j+1]
    col = jax.lax.broadcasted_iota(jnp.int32, (H, W), 1)
    left = jnp.where(col == 0, 0.0, pltpu.roll(x, shift=1, axis=1))        # x[i, j-1]
    right = jnp.where(col == W - 1, 0.0, pltpu.roll(x, shift=W - 1, axis=1))  # x[i, j+1]
    tmp = _G_M * left + _G_C * x + _G_P * right

    # ---- vertical (sublane) pass: out[i,j] = g*tmp[i-1,j] + g*tmp[i,j] + g*tmp[i+1,j]
    row = jax.lax.broadcasted_iota(jnp.int32, (H, W), 0)
    up = jnp.where(row == 0, 0.0, pltpu.roll(tmp, shift=1, axis=0))           # tmp[i-1, j]
    down = jnp.where(row == H - 1, 0.0, pltpu.roll(tmp, shift=H - 1, axis=0))  # tmp[i+1, j]
    out = _G_M * up + _G_C * tmp + _G_P * down

    o_ref[0] = out.astype(o_ref.dtype)


def retina_forward(ipt):
    """Gaussian-blur an NCHW tensor with a 3x3, sigma=1.0 kernel (zero 'same' pad)."""
    N, C, H, W = ipt.shape
    x = ipt.reshape(N * C, H, W)

    out = pl.pallas_call(
        _retina_blur_kernel,
        out_shape=jax.ShapeDtypeStruct((N * C, H, W), ipt.dtype),
        grid_spec=pltpu.PrefetchScalarGridSpec(
            num_scalar_prefetch=0,
            grid=(N * C,),
            in_specs=[pl.BlockSpec((1, H, W), lambda i: (i, 0, 0))],
            out_specs=pl.BlockSpec((1, H, W), lambda i: (i, 0, 0)),
        ),
        compiler_params=pltpu.CompilerParams(
            dimension_semantics=("parallel",),
        ),
    )(x)
    return out.reshape(N, C, H, W)


class RetinaPallas:
    """Stateless wrapper mirroring the PyTorch Retina module."""

    def __init__(self):
        self.kernel_size = KERNEL_SIZE
        self.sigma = SIGMA

    def init_config(self):
        pass

    def forward(self, iptTensor):
        return retina_forward(iptTensor)

    __call__ = forward


def _reference_blur(x):
    """Pure-JAX reference: depthwise 3x3 Gaussian conv, zero 'same' padding."""
    g = jnp.array([_G_M, _G_C, _G_P], jnp.float32)
    k2d = jnp.outer(g, g)                                   # (3, 3)
    N, C, H, W = x.shape
    k = jnp.broadcast_to(k2d, (C, 1, KERNEL_SIZE, KERNEL_SIZE))
    return jax.lax.conv_general_dilated(
        x.astype(jnp.float32), k,
        window_strides=(1, 1), padding="SAME",
        dimension_numbers=("NCHW", "OIHW", "NCHW"),
        feature_group_count=C,
        precision=jax.lax.Precision.HIGHEST,
    ).astype(x.dtype)


if __name__ == "__main__":
    key = jax.random.PRNGKey(0)
    # Small, deterministic NCHW input: 2 grayscale frames, lane-dense W=128.
    x = jax.random.normal(key, (2, 1, 32, 128), dtype=jnp.float32)

    model = RetinaPallas()
    out = jax.block_until_ready(model(x))

    assert out.shape == x.shape
    assert bool(jnp.all(jnp.isfinite(out)))

    ref = _reference_blur(x)
    max_err = float(jnp.max(jnp.abs(out - ref)))
    assert bool(jnp.allclose(out, ref, atol=1e-4, rtol=1e-4)), max_err

    print("KERNEL_OK")
</pallas_src>

<mosaic_0001>
module attributes {stable_mosaic.version = 11 : i64} {
  func.func @_retina_blur_kernel(%arg0: i32, %arg1: memref<1x32x128xf32, #tpu.memory_space<vmem>>, %arg2: memref<1x32x128xf32, #tpu.memory_space<vmem>>) attributes {dimension_semantics = [#tpu.dimension_semantics<parallel>], iteration_bounds = array<i64: 2>, scalar_prefetch = 0 : i64, scratch_operands = 0 : i64, tpu.core_type = #tpu.core_type<tc>, window_params = [{transform_indices = @transform_0, window_bounds = array<i64: 1, 32, 128>}, {transform_indices = @transform_1, window_bounds = array<i64: 1, 32, 128>}]} {
    %c0 = arith.constant 0 : index
    %c0_0 = arith.constant 0 : index
    %c0_1 = arith.constant 0 : index
    %0 = vector.load %arg1[%c0, %c0_0, %c0_1] : memref<1x32x128xf32, #tpu.memory_space<vmem>>, vector<1x32x128xf32>
    %1 = vector.shape_cast %0 : vector<1x32x128xf32> to vector<32x128xf32>
    %2 = tpu.iota {dimensions = array<i32: 1>} : vector<32x128xi32>
    %c0_i32 = arith.constant 0 : i32
    %3 = vector.broadcast %c0_i32 : i32 to vector<32x128xi32>
    %4 = arith.cmpi eq, %2, %3 : vector<32x128xi32>
    %c1_i32 = arith.constant 1 : i32
    %5 = tpu.dynamic_rotate %1 by %c1_i32 dim 1 : vector<32x128xf32>, i32 -> vector<32x128xf32>
    %cst = arith.constant 0.000000e+00 : f32
    %6 = vector.broadcast %cst : f32 to vector<32x128xf32>
    %7 = arith.select %4, %6, %5 : vector<32x128xi1>, vector<32x128xf32>
    %c127_i32 = arith.constant 127 : i32
    %8 = vector.broadcast %c127_i32 : i32 to vector<32x128xi32>
    %9 = arith.cmpi eq, %2, %8 : vector<32x128xi32>
    %c127_i32_2 = arith.constant 127 : i32
    %10 = tpu.dynamic_rotate %1 by %c127_i32_2 dim 1 : vector<32x128xf32>, i32 -> vector<32x128xf32>
    %cst_3 = arith.constant 0.000000e+00 : f32
    %11 = vector.broadcast %cst_3 : f32 to vector<32x128xf32>
    %12 = arith.select %9, %11, %10 : vector<32x128xi1>, vector<32x128xf32>
    %cst_4 = arith.constant 0.274068624 : f32
    %13 = vector.broadcast %cst_4 : f32 to vector<32x128xf32>
    %14 = arith.mulf %13, %7 : vector<32x128xf32>
    %cst_5 = arith.constant 0.451862752 : f32
    %15 = vector.broadcast %cst_5 : f32 to vector<32x128xf32>
    %16 = arith.mulf %15, %1 : vector<32x128xf32>
    %17 = arith.addf %14, %16 : vector<32x128xf32>
    %cst_6 = arith.constant 0.274068624 : f32
    %18 = vector.broadcast %cst_6 : f32 to vector<32x128xf32>
    %19 = arith.mulf %18, %12 : vector<32x128xf32>
    %20 = arith.addf %17, %19 : vector<32x128xf32>
    %21 = tpu.iota {dimensions = array<i32: 0>} : vector<32x128xi32>
    %c0_i32_7 = arith.constant 0 : i32
    %22 = vector.broadcast %c0_i32_7 : i32 to vector<32x128xi32>
    %23 = arith.cmpi eq, %21, %22 : vector<32x128xi32>
    %c1_i32_8 = arith.constant 1 : i32
    %24 = tpu.dynamic_rotate %20 by %c1_i32_8 dim 0 : vector<32x128xf32>, i32 -> vector<32x128xf32>
    %cst_9 = arith.constant 0.000000e+00 : f32
    %25 = vector.broadcast %cst_9 : f32 to vector<32x128xf32>
    %26 = arith.select %23, %25, %24 : vector<32x128xi1>, vector<32x128xf32>
    %c31_i32 = arith.constant 31 : i32
    %27 = vector.broadcast %c31_i32 : i32 to vector<32x128xi32>
    %28 = arith.cmpi eq, %21, %27 : vector<32x128xi32>
    %c31_i32_10 = arith.constant 31 : i32
    %29 = tpu.dynamic_rotate %20 by %c31_i32_10 dim 0 : vector<32x128xf32>, i32 -> vector<32x128xf32>
    %cst_11 = arith.constant 0.000000e+00 : f32
    %30 = vector.broadcast %cst_11 : f32 to vector<32x128xf32>
    %31 = arith.select %28, %30, %29 : vector<32x128xi1>, vector<32x128xf32>
    %cst_12 = arith.constant 0.274068624 : f32
    %32 = vector.broadcast %cst_12 : f32 to vector<32x128xf32>
    %33 = arith.mulf %32, %26 : vector<32x128xf32>
    %cst_13 = arith.constant 0.451862752 : f32
    %34 = vector.broadcast %cst_13 : f32 to vector<32x128xf32>
    %35 = arith.mulf %34, %20 : vector<32x128xf32>
    %36 = arith.addf %33, %35 : vector<32x128xf32>
    %cst_14 = arith.constant 0.274068624 : f32
    %37 = vector.broadcast %cst_14 : f32 to vector<32x128xf32>
    %38 = arith.mulf %37, %31 : vector<32x128xf32>
    %39 = arith.addf %36, %38 : vector<32x128xf32>
    %c0_15 = arith.constant 0 : index
    %c0_16 = arith.constant 0 : index
    %c0_17 = arith.constant 0 : index
    %40 = vector.load %arg2[%c0_15, %c0_16, %c0_17] : memref<1x32x128xf32, #tpu.memory_space<vmem>>, vector<1x32x128xf32>
    %41 = vector.shape_cast %40 : vector<1x32x128xf32> to vector<32x128xf32>
    %42 = vector.shape_cast %39 : vector<32x128xf32> to vector<1x32x128xf32>
    tpu.vector_store %arg2[%c0_15, %c0_16, %c0_17], %42 {strides = array<i32>} : memref<1x32x128xf32, #tpu.memory_space<vmem>>, vector<1x32x128xf32>,
    return
  }
  func.func @transform_0(%arg0: i32) -> (i32, i32, i32) {
    %c0_i32 = arith.constant 0 : i32
    %c0_i32_0 = arith.constant 0 : i32
    %c0_i32_1 = arith.constant 0 : i32
    return %arg0, %c0_i32, %c0_i32_0 : i32, i32, i32
  }
  func.func @transform_1(%arg0: i32) -> (i32, i32, i32) {
    %c0_i32 = arith.constant 0 : i32
    %c0_i32_0 = arith.constant 0 : i32
    %c0_i32_1 = arith.constant 0 : i32
    return %arg0, %c0_i32, %c0_i32_0 : i32, i32, i32
  }
}

</mosaic_0001>

<bundles_post_ra>
// kernel: tpu_custom_call.1
= control target key start
LH: loop header
LB: loop body
LE: loop exit
PB: predicated region body
PF: predicated region fallthrough
CT: control target
= control target key end

     0   :  { %6 = vsyncpa [#allocation3], 0  ;;  %s671_s0 = inlined_call_operand.hbm [shape: f32[2,32,128], index: 0, kind: input, shape index: {}]   ;;  %s672_s1 = inlined_call_operand.hbm [shape: f32[2,32,128], index: 1, kind: output, shape index: {}]  }
   0x1   :  { %8 = vsyncpa [#allocation3 + $0x1], 0 }
   0x2   :  { %9 = vsyncpa [#allocation4], 0 }
   0x3   :  { %11 = vsyncpa [#allocation4 + $0x1], 0  ;;  %s523_s6 = smov 0   ;;  %s525_s7 = smov 0  }
   0x4   :  { %s527_s8 = smov 0   ;;  %s529_s9 = smov 0  }
   0x5 LB: > { %s544_s10 = sadd.s32 4294967295, %s505_s9   ;;  %s341_s11 = sadd.s32 4294967294, %s505_s9   ;;  %s505_s9 = sphi %s529_s9, %s682_s9   ;;  %s501_s8 = sphi %s527_s8, %s681_s8   ;;  %s497_s7 = sphi %s525_s7, %s680_s7   ;;  %s493_s6 = sphi %s523_s6, %s679_s6  }
   0x6   : > { %s548_s12 = sadd.s32 1, %s505_s9   ;;  %s24_s13 = sadd.s32 1, %s501_s8 }
   0x7   : > { %s21_s14 = ssub.s32 %s505_s9, %s548_s12  ;;  %p31_p0 = scmp.ne.s32.totalorder %s501_s8, %s497_s7 }
   0x8   : > { %p22_p1 = scmp.eq.s32.totalorder %s21_s14, 0  ;;  %p32_p2 = scmp.eq.s32.totalorder %s505_s9, 0 }
   0x9   : > { %p37_p3 = scmp.ne.s32.totalorder %s497_s7, %s493_s6  ;;  %p38_p4 = scmp.eq.s32.totalorder %s544_s10, 0 }
   0xa   : > { %s560_s15 = scalar_select %p22_p1, %s501_s8, %s24_s13  }
   0xb   : > { %p562_p5 = por %p32_p2, %p31_p0  ;;  %p566_p6 = por %p38_p4, %p37_p3 }
   0xc   : > { %p61_p7 = scmp.eq.s32.totalorder %s544_s10, 1  ;;  %p67_p8 = scmp.eq.s32.totalorder %s341_s11, 1 }
   0xd   : > { %p369_p10 = scmp.lt.s32.totalorder %s505_s9, 2  ;;  %s87_s20 = sand.u32 1, %s501_s8  }
   0xe   : > { %p573_p11 = por %p61_p7, %p31_p0  ;;  %p577_p12 = por %p67_p8, %p37_p3 }
   0xf   : > { %s355_s21 = sshll.u32 %s505_s9, 5  ;;  %s344_s22 = sshll.u32 %s87_s20, 5 }
  0x10   : > { %s96_s25 = scalar_lea.hbm %s671_s0, %s355_s21  ;;  %s91_s27 = scalar_lea.vmem [#allocation2], %s344_s22 }
  0x11   : > { %s97_s26 = sshll.u32 %s96_s25, 4  ;;  %s99_s28 = sshll.u32 %s91_s27, 4  ;;  %s98_s26 = int_to_ptr.hbm [resolvable:$true] %s97_s26  ;;  %s100_s28 = int_to_ptr.vmem [resolvable:$true] %s99_s28 }
  0x12   : > { %p588_p13 = pnand %p369_p10, %p562_p5  ;;  %p347_p0 = scmp.ge.s32.totalorder %s505_s9, 1 }
  0x13   : > { %p107_p1 = scmp.lt.s32.totalorder %s505_s9, 3  ;;  %s88_s30 = scalar_lea.sflag [#allocation3], %s87_s20 }
  0x14   : > { %s409_s2 = sshra.s32 %s98_s26, 4  ;;  %p413_p3 = pneg %p588_p13  ;;  %s410_s2 = int_to_ptr.hbm [resolvable:$true] %s409_s2 }
  0x15   : > { %s411_s3 = scalar_lea.hbm %s410_s2, 32  ;;  %s416_s11 = scalar_lea.hbm %s671_s0, 64 }
  0x16   : > { %p412_p2 = scmp.ne.s32.totalorder %s410_s2, %s411_s3  ;;  %p417_p5 = scmp.lt.s32.totalorder %s410_s2, %s671_s0 }
  0x17   : > { %p418_p8 = scmp.lt.s32.totalorder %s416_s11, %s411_s3 }
  0x18   : > { %p414_p4 = pnand %p413_p3, %p412_p2 }
  0x19   : > { %p419_p10 = por %p418_p8, %p417_p5 }
  0x1a   : > { %p415_p7 = pneg %p414_p4 }
  0x1c   : > { %p420_p9 = pnand %p419_p10, %p415_p7 }
  0x1e   : > { %423 = shalt.err (!%p420_p9)
}
  0x1f   : > { %s507_s16 = smov 128   ;;  %s508_s20 = smov 8  }
  0x20   : > { %364 = dma.hbm_to_vmem [thread:$0]  (!%p588_p13), %s98_s26, 512, %s100_s28, %s88_s30, %s507_s16, %s507_s16, %s508_s20  }
  0x21   : > { %p108_p2 = pnand %p347_p0, %p107_p1 }
  0x22   : > { %s609_s21 = sand.u32 (!%p108_p2), 1, %s497_s7  }
  0x23   : > { %111 = sbr.rel (%p108_p2) target bundleno = 193 (0xc1), region = 24  ;;  %s348_s22 = sshll.u32 (!%p108_p2), %s609_s21, 5 }
  0x24   : > { %s114_s23 = scalar_lea.sflag (!%p108_p2), [#allocation3], %s609_s21  ;;  %s117_s24 = scalar_lea.vmem (!%p108_p2), [#allocation2], %s348_s22 }
  0x28   : > { %484 = dma.done.wait (%p566_p6), %s114_s23, 512  }
  0x29   : > { %486 = vsyncadd (%p566_p6), %s114_s23, 4294966784  ;;  %v138_v0 = vld [vmem:[%s117_s24 + $0x8] sm:$0xff]  ;;  %v137_v1 = vld [vmem:[%s117_s24] sm:$0xff]  ;;  %s509_s25 = smov 1   ;;  %s510_s26 = smov 127   ;;  %v141_v4 = vlaneseq }
  0x2a   : > { %146 = vrot.lane.b32.xlu1 %v138_v0, %s509_s25  ;;  %144 = vrot.lane.b32.xlu0 %v137_v1, %s509_s25  ;;  %v139_v2 = vld [vmem:[%s117_s24 + $0x10] sm:$0xff]  ;;  %v140_v3 = vld [vmem:[%s117_s24 + $0x18] sm:$0xff]  ;;  %v173_v10 = vmul.f32 0.45186275, %v137_v1  ;;  %v174_v26 = vmul.f32 0.45186275, %v138_v0 }
  0x2b   : > { %157 = vrot.lane.b32.xlu2 %v137_v1, %s510_s26  ;;  %v142_v5 = vand.u32 127, %v141_v4  ;;  %v176_v15 = vmul.f32 0.45186275, %v140_v3  ;;  %v190_v25 = vshrl.u32 %v141_v4, 7  ;;  %v175_v29 = vmul.f32 0.45186275, %v139_v2 }
  0x2c   : > { %s356_s17 = sshll.u32 %s544_s10, 5  ;;  %s136_s29 = scalar_lea.vmem [#allocation5], %s348_s22 }
  0x2d   : > { %vm143_vm0 = vcmp.eq.s32.totalorder %v142_v5, 0  ;;  %vm156_vm1 = vcmp.eq.s32.totalorder %v142_v5, 127  ;;  %v193_v33 = vadd.s32 24, %v190_v25  ;;  %vm194_vm2 = vcmp.eq.s32.totalorder %v190_v25, 0  ;;  %s264_s10 = scalar_lea.hbm %s672_s1, %s356_s17  ;;  %s265_s30 = sshll.u32 %s136_s29, 4  ;;  %s266_s30 = int_to_ptr.vmem [resolvable:$true] %s265_s30 }
  0x2e   : > { %vm202_vm3 = vcmp.lt.s32.totalorder %v190_v25, 1  ;;  %vm219_vm4 = vcmp.lt.s32.totalorder %v190_v25, 7  ;;  %s267_s2 = sshll.u32 %s264_s10, 4  ;;  %s253_s3 = scalar_lea.sflag [#allocation4], %s609_s21  ;;  %s268_s2 = int_to_ptr.hbm [resolvable:$true] %s267_s2 }
  0x2f   : > { %vm214_vm5 = vcmp.eq.s32.totalorder %v193_v33, 31  ;;  %s453_s4 = sshra.s32 %s268_s2, 4  ;;  %s459_s14 = scalar_lea.hbm %s672_s1, 64  ;;  %s454_s4 = int_to_ptr.hbm [resolvable:$true] %s453_s4 }
  0x30   : > { %s455_s5 = scalar_lea.hbm %s454_s4, 32  ;;  %p460_p0 = scmp.lt.s32.totalorder %s454_s4, %s672_s1 }
  0x31   : > { %p456_p6 = scmp.ne.s32.totalorder %s454_s4, %s455_s5  ;;  %p461_p1 = scmp.lt.s32.totalorder %s459_s14, %s455_s5 }
  0x32   : > { %148 = vrot.lane.b32.xlu1 %v139_v2, %s509_s25  ;;  %150 = vrot.lane.b32.xlu0 %v140_v3, %s509_s25 }
  0x33   : > { %163 = vrot.lane.b32.xlu2 %v140_v3, %s510_s26  ;;  %p457_p9 = pnand %p456_p6, %p573_p11  ;;  %p462_p3 = por %p461_p1, %p460_p0 }
  0x35   : > { %p458_p13 = pneg %p457_p9 }
  0x37   : > { %p463_p4 = pnand %p462_p3, %p458_p13 }
  0x3a   : > { %161 = vrot.lane.b32.xlu1 %v139_v2, %s510_s26  ;;  %159 = vrot.lane.b32.xlu0 %v138_v0, %s510_s26 }
  0x85   : > { %v158_v6 = vpop.permute.xlu2 %157 }
  0x86   : > { %v165_v13 = vsel %vm156_vm1, 0.0, %v158_v6 }
  0x87   : > { %v181_v17 = vmul.f32 0.27406862, %v165_v13 }
  0x8d   : > { %v164_v12 = vpop.permute.xlu2 %163 }
  0x8e   : > { %v168_v14 = vsel %vm156_vm1, 0.0, %v164_v12 }
  0x8f   : > { %v184_v24 = vmul.f32 0.27406862, %v168_v14 }
  0x9c   : > { %v147_v7 = vpop.permute.xlu1 %146  ;;  %v145_v8 = vpop.permute.xlu0 %144 }
  0x9d   : > { %v152_v9 = vsel %vm143_vm0, 0.0, %v145_v8  ;;  %v153_v21 = vsel %vm143_vm0, 0.0, %v147_v7 }
  0x9e   : > { %v169_v11 = vmul.f32 0.27406862, %v152_v9  ;;  %v170_v30 = vmul.f32 0.27406862, %v153_v21 }
  0xa0   : > { %v177_v16 = vadd.f32 %v173_v10, %v169_v11  ;;  %v178_v40 = vadd.f32 %v174_v26, %v170_v30 }
  0xa2   : > { %v185_v27 = vadd.f32 %v181_v17, %v177_v16 }
  0xa4   : > { %v149_v18 = vpop.permute.xlu1 %148  ;;  %v151_v19 = vpop.permute.xlu0 %150  ;;  %v198_v34 = vrot.slane %v185_v27, 7  ;;  %v215_v35 = vrot.slane %v185_v27, 1  ;;  %v232_v49 = vmul.f32 0.45186275, %v185_v27 }
  0xa5   : > { %v155_v20 = vsel %vm143_vm0, 0.0, %v151_v19  ;;  %v154_v22 = vsel %vm143_vm0, 0.0, %v149_v18 }
  0xa6   : > { %v172_v23 = vmul.f32 0.27406862, %v155_v20  ;;  %v171_v31 = vmul.f32 0.27406862, %v154_v22 }
  0xa8   : > { %v180_v28 = vadd.f32 %v176_v15, %v172_v23  ;;  %v179_v41 = vadd.f32 %v175_v29, %v171_v31 }
  0xaa   : > { %v188_v32 = vadd.f32 %v184_v24, %v180_v28 }
  0xac   : > { %v201_v36 = vrot.slane %v188_v32, 7  ;;  %v218_v37 = vrot.slane %v188_v32, 1  ;;  %v162_v38 = vpop.permute.xlu1 %161  ;;  %v160_v39 = vpop.permute.xlu0 %159  ;;  %v235_v56 = vmul.f32 0.45186275, %v188_v32 }
  0xad   : > { %v167_v42 = vsel %vm156_vm1, 0.0, %v162_v38  ;;  %v166_v43 = vsel %vm156_vm1, 0.0, %v160_v39 }
  0xae   : > { %v206_v44 = vsel %vm202_vm3, %v201_v36, %v198_v34  ;;  %v223_v45 = vsel %vm219_vm4, %v218_v37, %v215_v35  ;;  %v183_v46 = vmul.f32 0.27406862, %v167_v42  ;;  %v182_v47 = vmul.f32 0.27406862, %v166_v43 }
  0xaf   : > { %v207_v48 = vsel %vm194_vm2, 0.0, %v206_v44  ;;  %v227_v59 = vsel %vm214_vm5, 0.0, %v223_v45 }
  0xb0   : > { %v228_v50 = vmul.f32 0.27406862, %v207_v48  ;;  %v187_v51 = vadd.f32 %v183_v46, %v179_v41  ;;  %v186_v52 = vadd.f32 %v182_v47, %v178_v40  ;;  %v243_v7 = vmul.f32 0.27406862, %v227_v59 }
  0xb2   : > { %v236_v53 = vadd.f32 %v232_v49, %v228_v50  ;;  %v200_v54 = vrot.slane %v187_v51, 7  ;;  %v217_v55 = vrot.slane %v187_v51, 1  ;;  %v199_v57 = vrot.slane %v186_v52, 7 }
  0xb3   : > { %v216_v58 = vrot.slane %v186_v52, 1  ;;  %v234_v62 = vmul.f32 0.45186275, %v187_v51  ;;  %v233_v2 = vmul.f32 0.45186275, %v186_v52 }
  0xb4   : > { %v203_v60 = vsel %vm202_vm3, %v200_v54, %v201_v36  ;;  %v220_v61 = vsel %vm219_vm4, %v217_v55, %v218_v37  ;;  %v204_v0 = vsel %vm202_vm3, %v199_v57, %v200_v54  ;;  %v205_v1 = vsel %vm202_vm3, %v198_v34, %v199_v57 }
  0xb5   : > { %v231_v63 = vmul.f32 0.27406862, %v203_v60  ;;  %v221_v3 = vsel %vm219_vm4, %v216_v58, %v217_v55  ;;  %v222_v4 = vsel %vm219_vm4, %v215_v35, %v216_v58  ;;  %v229_v5 = vmul.f32 0.27406862, %v205_v1 }
  0xb6   : > { %v230_v6 = vmul.f32 0.27406862, %v204_v0  ;;  %v240_v9 = vmul.f32 0.27406862, %v222_v4  ;;  %v242_v10 = vmul.f32 0.27406862, %v220_v61 }
  0xb7   : > { %v239_v8 = vadd.f32 %v235_v56, %v231_v63  ;;  %v237_v11 = vadd.f32 %v233_v2, %v229_v5  ;;  %v241_v13 = vmul.f32 0.27406862, %v221_v3 }
  0xb8   : > { %v238_v12 = vadd.f32 %v234_v62, %v230_v6  ;;  %v244_v15 = vadd.f32 %v240_v9, %v236_v53 }
  0xb9   : > { %v247_v14 = vadd.f32 %v243_v7, %v239_v8  ;;  %v245_v16 = vadd.f32 %v241_v13, %v237_v11 }
  0xba   : > { %v246_v17 = vadd.f32 %v242_v10, %v238_v12  ;;  %248 = vst [vmem:[%s136_s29] sm:$0xff] %v244_v15 }
  0xbb   : > { %251 = vst [vmem:[%s136_s29 + $0x18] sm:$0xff] %v247_v14 }
  0xbc   : > { %249 = vst [vmem:[%s136_s29 + $0x8] sm:$0xff] %v245_v16 }
  0xbd   : > { %250 = vst [vmem:[%s136_s29 + $0x10] sm:$0xff] %v246_v17 }
  0xbe   : > { %466 = shalt.err (!%p463_p4)
}
  0xbf   : > { %s511_s21 = smov 128   ;;  %s512_s22 = smov 8  }
  0xc0   : > { %359 = dma.vmem_to_hbm [thread:$0]  (%p573_p11), %s266_s30, 512, %s268_s2, %s253_s3, %s511_s21, %s511_s21, %s512_s22  }
  0xc1 PF: > { %s282_s23 = sand.u32 1, %s493_s6   ;;  %p678_p7 = scmp.ge.s32.totalorder %s505_s9, 2 }
  0xc2   : > { %s283_s24 = scalar_lea.sflag [#allocation4], %s282_s23 }
  0xc3   : > { %p366_p5 = pnand %p678_p7, %p577_p12 }
  0xc5   : > { %p367_p8 = pneg %p366_p5 }
  0xc7   : > { %488 = dma.done.wait (%p367_p8), %s283_s24, 512  }
  0xc8   : > { %490 = vsyncadd (%p367_p8), %s283_s24, 4294966784  ;;  %p14_p10 = scmp.ge.s32.totalorder %s548_s12, 4   ;;  %s679_s6 = smov %s497_s7 }
  0xc9   : > { %s680_s7 = smov %s501_s8  ;;  %s681_s8 = smov %s560_s15 }
  0xca   : > { %s682_s9 = smov %s548_s12  ;;  %16 = sbr.rel (!%p14_p10) target bundleno = 5 (0x5), region = 69 }
  0xcf   :  { %289 = vsyncpa [#allocation3], 1 }
  0xd0   :  { %291 = vsyncpa [#allocation3 + $0x1], 1 }
  0xd1   :  { %292 = vsyncpa [#allocation4], 1 }
  0xd2   :  { %294 = vsyncpa [#allocation4 + $0x1], 1 }

</bundles_post_ra>
